<compile_context>
chip_gen: v7x
topology: tpu7x:2x2x1
jax: 0.10.0
libtpu: 0.0.40
codegen_flags: <defaults>
</compile_context>

<pallas_src>
import functools

import jax
import jax.numpy as jnp
from jax.experimental import pallas as pl
from jax.experimental.pallas import tpu as pltpu


# --------------------------------------------------------------------------
# Kernel: one grid step == one (batch, head) pair.
#   q/k/v blocks : (1, 1, S, hd)   head-major activations
#   bias block   : (1, S, S)       additive mask bias for this batch
#   wq/wk/wv     : (hd, hd)        pre-transposed projection weights (shared)
#   wo block     : (1, hd, E)      this head's rows of W_out.T
#   b block      : (1, E)
#   out block    : (1, S, E)       resident across the heads grid axis
# --------------------------------------------------------------------------
def self_attention_kernel(q_ref, k_ref, v_ref, bias_ref,
                          wq_ref, wk_ref, wv_ref, wo_ref, b_ref,
                          o_ref, *, scale):
    h = pl.program_id(1)

    q = q_ref[0, 0]                       # (S, hd)
    k = k_ref[0, 0]
    v = v_ref[0, 0]

    # Per-head projections; fold the 1/sqrt(E) scale into q once (not per logit).
    qp = jnp.dot(q, wq_ref[...], preferred_element_type=jnp.float32) * jnp.float32(scale)
    kp = jnp.dot(k, wk_ref[...], preferred_element_type=jnp.float32)
    vp = jnp.dot(v, wv_ref[...], preferred_element_type=jnp.float32)

    # energy = qp @ kp^T (contract head_dim directly, no transpose) + additive mask bias.
    e = jax.lax.dot_general(qp, kp, (((1,), (1,)), ((), ())),
                            preferred_element_type=jnp.float32)   # (S, S)
    e = e + bias_ref[0]

    # Numerically stable softmax; normalize AFTER the PV matmul (exact divide,
    # S*hd elements instead of S*S).
    m = jnp.max(e, axis=-1, keepdims=True)
    p = jnp.exp(e - m)
    l = jnp.sum(p, axis=-1, keepdims=True)
    ctx = jnp.dot(p, vp, preferred_element_type=jnp.float32)      # (S, hd)
    ctx = ctx / l

    # Head merge + output projection folded into the heads grid axis:
    #   out = sum_h ctx_h @ W_out.T[h*hd:(h+1)*hd, :] + b
    contrib = jnp.dot(ctx, wo_ref[0], preferred_element_type=jnp.float32)   # (S, E)

    @pl.when(h == 0)
    def _():
        o_ref[0] = jnp.broadcast_to(b_ref[...], contrib.shape).astype(o_ref.dtype)

    o_ref[0] += contrib.astype(o_ref.dtype)


# --------------------------------------------------------------------------
# Python wrapper
# --------------------------------------------------------------------------
def self_attention_forward(values, keys, query, mask, params, *, embed_size, heads):
    W_values, W_keys, W_query, W_out, B_out = params
    N, S, E = values.shape
    assert E == embed_size and E % heads == 0
    hd = E // heads

    # Head-major activations: (N, heads, S, hd)  (same split the PyTorch module does).
    def split_heads(x):
        return x.reshape(N, S, heads, hd).transpose(0, 2, 1, 3)

    q_hm = split_heads(query)
    k_hm = split_heads(keys)
    v_hm = split_heads(values)

    # Pre-transposed weights; W_out.T split into per-head row blocks.
    wq_t = W_query.T                                  # (hd, hd)
    wk_t = W_keys.T                                   # (hd, hd)
    wv_t = W_values.T                                 # (hd, hd)
    wo_t = W_out.T.reshape(heads, hd, E)              # (heads, hd, E)
    b2 = B_out.reshape(1, E)

    # Additive mask bias, per batch (1 = keep -> 0.0, 0 = mask -> -1e20).
    # TODO(synk): per-(batch, head) masks would need a head-dependent index_map too.
    mask_b = jnp.broadcast_to(mask, (N, S, S))
    bias = jnp.where(mask_b == 0, jnp.float32(-1e20), jnp.float32(0.0))

    scale = 1.0 / float(embed_size) ** 0.5

    return pl.pallas_call(
        functools.partial(self_attention_kernel, scale=scale),
        out_shape=jax.ShapeDtypeStruct((N, S, E), jnp.float32),
        grid_spec=pltpu.PrefetchScalarGridSpec(
            num_scalar_prefetch=0,
            grid=(N, heads),                                       # heads (reduction) last
            in_specs=[
                pl.BlockSpec((1, 1, S, hd), lambda b, h: (b, h, 0, 0)),   # query
                pl.BlockSpec((1, 1, S, hd), lambda b, h: (b, h, 0, 0)),   # keys
                pl.BlockSpec((1, 1, S, hd), lambda b, h: (b, h, 0, 0)),   # values
                pl.BlockSpec((1, S, S),     lambda b, h: (b, 0, 0)),      # additive mask bias
                pl.BlockSpec((hd, hd),      lambda b, h: (0, 0)),         # W_query^T (shared)
                pl.BlockSpec((hd, hd),      lambda b, h: (0, 0)),         # W_keys^T  (shared)
                pl.BlockSpec((hd, hd),      lambda b, h: (0, 0)),         # W_values^T (shared)
                pl.BlockSpec((1, hd, E),    lambda b, h: (h, 0, 0)),      # W_out^T rows of head h
                pl.BlockSpec((1, E),        lambda b, h: (0, 0)),         # bias
            ],
            out_specs=pl.BlockSpec((1, S, E), lambda b, h: (b, 0, 0)),    # resident over heads
        ),
        compiler_params=pltpu.CompilerParams(
            dimension_semantics=("parallel", "arbitrary")),
    )(q_hm, k_hm, v_hm, bias, wq_t, wk_t, wv_t, wo_t, b2)


# --------------------------------------------------------------------------
# Pure-JAX reference (mirrors the PyTorch forward) for a correctness check.
# --------------------------------------------------------------------------
def ref_forward(values, keys, query, mask, params, *, embed_size, heads):
    W_values, W_keys, W_query, W_out, B_out = params
    N, S, E = values.shape
    hd = E // heads

    def split(x):
        return (x.reshape(N, S, heads, hd).transpose(0, 2, 1, 3)
                 .reshape(N * heads, S, hd))

    v = split(values) @ W_values.T
    k = split(keys) @ W_keys.T
    q = split(query) @ W_query.T
    energy = jnp.einsum('bqd,bkd->bqk', q, k) / (embed_size ** 0.5)
    mask_b = jnp.broadcast_to(mask, energy.shape)
    energy = jnp.where(mask_b == 0, -1e20, energy)
    attn = jax.nn.softmax(energy, axis=-1)
    out = jnp.einsum('bqk,bkd->bqd', attn, v)
    out = (out.reshape(N, heads, S, hd).transpose(0, 2, 1, 3)
              .reshape(N, S, heads * hd))
    return out @ W_out.T + B_out


def xavier_uniform(key, shape):
    fan_in, fan_out = shape[1], shape[0]
    bound = (6.0 / (fan_in + fan_out)) ** 0.5
    return jax.random.uniform(key, shape, jnp.float32, -bound, bound)


if __name__ == "__main__":
    embed_size = 32
    heads = 4
    head_dim = embed_size // heads
    N = 2
    seq_len = 8

    key = jax.random.PRNGKey(0)
    kv, kk, kq, ko, kx1, kx2, kx3 = jax.random.split(key, 7)

    # Deterministic parameter init (xavier-uniform-like, zero bias).
    W_values = xavier_uniform(kv, (head_dim, head_dim))
    W_keys = xavier_uniform(kk, (head_dim, head_dim))
    W_query = xavier_uniform(kq, (head_dim, head_dim))
    W_out = xavier_uniform(ko, (embed_size, heads * head_dim))
    B_out = jnp.zeros((embed_size,), jnp.float32)
    params = (W_values, W_keys, W_query, W_out, B_out)

    values = jax.random.normal(kx1, (N, seq_len, embed_size), jnp.float32)
    keys = jax.random.normal(kx2, (N, seq_len, embed_size), jnp.float32)
    query = jax.random.normal(kx3, (N, seq_len, embed_size), jnp.float32)

    # Causal mask (1 = keep, 0 = mask) shared across batch & heads.
    mask = jnp.tril(jnp.ones((seq_len, seq_len), jnp.int32))

    out = self_attention_forward(values, keys, query, mask, params,
                                 embed_size=embed_size, heads=heads)
    out = jax.block_until_ready(out)

    ref = ref_forward(values, keys, query, mask, params,
                      embed_size=embed_size, heads=heads)
    assert out.shape == (N, seq_len, embed_size)
    assert jnp.allclose(out, ref, atol=1e-3, rtol=1e-3), \
        f"max abs err = {jnp.max(jnp.abs(out - ref))}"

    print("KERNEL_OK")
</pallas_src>

<mosaic_0001>
module attributes {stable_mosaic.version = 11 : i64} {
  func.func @self_attention_kernel(%arg0: i32, %arg1: i32, %arg2: memref<1x1x8x8xf32, #tpu.memory_space<vmem>>, %arg3: memref<1x1x8x8xf32, #tpu.memory_space<vmem>>, %arg4: memref<1x1x8x8xf32, #tpu.memory_space<vmem>>, %arg5: memref<1x8x8xf32, #tpu.memory_space<vmem>>, %arg6: memref<8x8xf32, #tpu.memory_space<vmem>>, %arg7: memref<8x8xf32, #tpu.memory_space<vmem>>, %arg8: memref<8x8xf32, #tpu.memory_space<vmem>>, %arg9: memref<1x8x32xf32, #tpu.memory_space<vmem>>, %arg10: memref<1x32xf32, #tpu.memory_space<vmem>>, %arg11: memref<1x8x32xf32, #tpu.memory_space<vmem>>) attributes {dimension_semantics = [#tpu.dimension_semantics<parallel>, #tpu.dimension_semantics<arbitrary>], iteration_bounds = array<i64: 2, 4>, scalar_prefetch = 0 : i64, scratch_operands = 0 : i64, tpu.core_type = #tpu.core_type<tc>, window_params = [{transform_indices = @transform_0, window_bounds = array<i64: 1, 1, 8, 8>}, {transform_indices = @transform_1, window_bounds = array<i64: 1, 1, 8, 8>}, {transform_indices = @transform_2, window_bounds = array<i64: 1, 1, 8, 8>}, {transform_indices = @transform_3, window_bounds = array<i64: 1, 8, 8>}, {pipeline_mode = #tpu.pipeline_mode<synchronous>, transform_indices = @transform_4, window_bounds = array<i64: 8, 8>}, {pipeline_mode = #tpu.pipeline_mode<synchronous>, transform_indices = @transform_5, window_bounds = array<i64: 8, 8>}, {pipeline_mode = #tpu.pipeline_mode<synchronous>, transform_indices = @transform_6, window_bounds = array<i64: 8, 8>}, {transform_indices = @transform_7, window_bounds = array<i64: 1, 8, 32>}, {pipeline_mode = #tpu.pipeline_mode<synchronous>, transform_indices = @transform_8, window_bounds = array<i64: 1, 32>}, {transform_indices = @transform_9, window_bounds = array<i64: 1, 8, 32>}]} {
    %c0 = arith.constant 0 : index
    %c0_0 = arith.constant 0 : index
    %c0_1 = arith.constant 0 : index
    %c0_2 = arith.constant 0 : index
    %0 = vector.load %arg2[%c0, %c0_0, %c0_1, %c0_2] : memref<1x1x8x8xf32, #tpu.memory_space<vmem>>, vector<1x1x8x8xf32>
    %1 = vector.shape_cast %0 : vector<1x1x8x8xf32> to vector<8x8xf32>
    %c0_3 = arith.constant 0 : index
    %c0_4 = arith.constant 0 : index
    %c0_5 = arith.constant 0 : index
    %c0_6 = arith.constant 0 : index
    %2 = vector.load %arg3[%c0_3, %c0_4, %c0_5, %c0_6] : memref<1x1x8x8xf32, #tpu.memory_space<vmem>>, vector<1x1x8x8xf32>
    %3 = vector.shape_cast %2 : vector<1x1x8x8xf32> to vector<8x8xf32>
    %c0_7 = arith.constant 0 : index
    %c0_8 = arith.constant 0 : index
    %c0_9 = arith.constant 0 : index
    %c0_10 = arith.constant 0 : index
    %4 = vector.load %arg4[%c0_7, %c0_8, %c0_9, %c0_10] : memref<1x1x8x8xf32, #tpu.memory_space<vmem>>, vector<1x1x8x8xf32>
    %5 = vector.shape_cast %4 : vector<1x1x8x8xf32> to vector<8x8xf32>
    %c0_11 = arith.constant 0 : index
    %c0_12 = arith.constant 0 : index
    %6 = vector.load %arg6[%c0_11, %c0_12] : memref<8x8xf32, #tpu.memory_space<vmem>>, vector<8x8xf32>
    %cst = arith.constant dense<0.000000e+00> : vector<8x8xf32>
    %7 = tpu.matmul %1, %6, %cst {dimension_numbers = #tpu.dot_dimension_numbers<[1], [0], [0], [1], [0, 0, 1, 1], [], []>} : vector<8x8xf32>, vector<8x8xf32>, vector<8x8xf32> -> vector<8x8xf32>
    %cst_13 = arith.constant 0.176776692 : f32
    %8 = vector.broadcast %cst_13 : f32 to vector<8x8xf32>
    %9 = arith.mulf %7, %8 : vector<8x8xf32>
    %c0_14 = arith.constant 0 : index
    %c0_15 = arith.constant 0 : index
    %10 = vector.load %arg7[%c0_14, %c0_15] : memref<8x8xf32, #tpu.memory_space<vmem>>, vector<8x8xf32>
    %cst_16 = arith.constant dense<0.000000e+00> : vector<8x8xf32>
    %11 = tpu.matmul %3, %10, %cst_16 {dimension_numbers = #tpu.dot_dimension_numbers<[1], [0], [0], [1], [0, 0, 1, 1], [], []>} : vector<8x8xf32>, vector<8x8xf32>, vector<8x8xf32> -> vector<8x8xf32>
    %c0_17 = arith.constant 0 : index
    %c0_18 = arith.constant 0 : index
    %12 = vector.load %arg8[%c0_17, %c0_18] : memref<8x8xf32, #tpu.memory_space<vmem>>, vector<8x8xf32>
    %cst_19 = arith.constant dense<0.000000e+00> : vector<8x8xf32>
    %13 = tpu.matmul %5, %12, %cst_19 {dimension_numbers = #tpu.dot_dimension_numbers<[1], [0], [0], [1], [0, 0, 1, 1], [], []>} : vector<8x8xf32>, vector<8x8xf32>, vector<8x8xf32> -> vector<8x8xf32>
    %cst_20 = arith.constant dense<0.000000e+00> : vector<8x8xf32>
    %14 = tpu.matmul %9, %11, %cst_20 {dimension_numbers = #tpu.dot_dimension_numbers<[1], [1], [0], [0], [0, 0, 1, 0], [], []>} : vector<8x8xf32>, vector<8x8xf32>, vector<8x8xf32> -> vector<8x8xf32>
    %c0_21 = arith.constant 0 : index
    %c0_22 = arith.constant 0 : index
    %c0_23 = arith.constant 0 : index
    %15 = vector.load %arg5[%c0_21, %c0_22, %c0_23] : memref<1x8x8xf32, #tpu.memory_space<vmem>>, vector<1x8x8xf32>
    %16 = vector.shape_cast %15 : vector<1x8x8xf32> to vector<8x8xf32>
    %17 = arith.addf %14, %16 : vector<8x8xf32>
    %cst_24 = arith.constant dense<0xFF800000> : vector<8xf32>
    %18 = vector.multi_reduction <maximumf>, %17, %cst_24 [1] : vector<8x8xf32> to vector<8xf32>
    %19 = vector.shape_cast %18 : vector<8xf32> to vector<8x1xf32>
    %20 = vector.broadcast %19 : vector<8x1xf32> to vector<8x8xf32>
    %21 = arith.subf %17, %20 : vector<8x8xf32>
    %22 = math.exp %21 : vector<8x8xf32>
    %cst_25 = arith.constant dense<0.000000e+00> : vector<8xf32>
    %23 = vector.multi_reduction <add>, %22, %cst_25 [1] : vector<8x8xf32> to vector<8xf32>
    %24 = vector.shape_cast %23 : vector<8xf32> to vector<8x1xf32>
    %cst_26 = arith.constant dense<0.000000e+00> : vector<8x8xf32>
    %25 = tpu.matmul %22, %13, %cst_26 {dimension_numbers = #tpu.dot_dimension_numbers<[1], [0], [0], [1], [0, 0, 1, 1], [], []>} : vector<8x8xf32>, vector<8x8xf32>, vector<8x8xf32> -> vector<8x8xf32>
    %26 = vector.broadcast %24 : vector<8x1xf32> to vector<8x8xf32>
    %27 = arith.divf %25, %26 : vector<8x8xf32>
    %c0_27 = arith.constant 0 : index
    %c0_28 = arith.constant 0 : index
    %c0_29 = arith.constant 0 : index
    %28 = vector.load %arg9[%c0_27, %c0_28, %c0_29] : memref<1x8x32xf32, #tpu.memory_space<vmem>>, vector<1x8x32xf32>
    %29 = vector.shape_cast %28 : vector<1x8x32xf32> to vector<8x32xf32>
    %cst_30 = arith.constant dense<0.000000e+00> : vector<8x32xf32>
    %30 = tpu.matmul %27, %29, %cst_30 {dimension_numbers = #tpu.dot_dimension_numbers<[1], [0], [0], [1], [0, 0, 1, 1], [], []>} : vector<8x8xf32>, vector<8x32xf32>, vector<8x32xf32> -> vector<8x32xf32>
    %c0_i32 = arith.constant 0 : i32
    %31 = arith.cmpi eq, %arg1, %c0_i32 : i32
    %32 = arith.extui %31 : i1 to i32
    %c0_i32_31 = arith.constant 0 : i32
    %33 = arith.cmpi ne, %32, %c0_i32_31 : i32
    scf.if %33 {
      %c0_38 = arith.constant 0 : index
      %c0_39 = arith.constant 0 : index
      %40 = vector.load %arg10[%c0_38, %c0_39] : memref<1x32xf32, #tpu.memory_space<vmem>>, vector<1x32xf32>
      %41 = vector.shape_cast %40 : vector<1x32xf32> to vector<1x32xf32>
      %42 = vector.broadcast %41 : vector<1x32xf32> to vector<8x32xf32>
      %c0_40 = arith.constant 0 : index
      %c0_41 = arith.constant 0 : index
      %c0_42 = arith.constant 0 : index
      %43 = vector.load %arg11[%c0_40, %c0_41, %c0_42] : memref<1x8x32xf32, #tpu.memory_space<vmem>>, vector<1x8x32xf32>
      %44 = vector.shape_cast %43 : vector<1x8x32xf32> to vector<8x32xf32>
      %45 = vector.shape_cast %42 : vector<8x32xf32> to vector<1x8x32xf32>
      tpu.vector_store %arg11[%c0_40, %c0_41, %c0_42], %45 {strides = array<i32>} : memref<1x8x32xf32, #tpu.memory_space<vmem>>, vector<1x8x32xf32>,
    } else {
    }
    %c0_32 = arith.constant 0 : index
    %c0_33 = arith.constant 0 : index
    %c0_34 = arith.constant 0 : index
    %34 = vector.load %arg11[%c0_32, %c0_33, %c0_34] : memref<1x8x32xf32, #tpu.memory_space<vmem>>, vector<1x8x32xf32>
    %35 = vector.shape_cast %34 : vector<1x8x32xf32> to vector<8x32xf32>
    %36 = arith.addf %35, %30 : vector<8x32xf32>
    %c0_35 = arith.constant 0 : index
    %c0_36 = arith.constant 0 : index
    %c0_37 = arith.constant 0 : index
    %37 = vector.load %arg11[%c0_35, %c0_36, %c0_37] : memref<1x8x32xf32, #tpu.memory_space<vmem>>, vector<1x8x32xf32>
    %38 = vector.shape_cast %37 : vector<1x8x32xf32> to vector<8x32xf32>
    %39 = vector.shape_cast %36 : vector<8x32xf32> to vector<1x8x32xf32>
    tpu.vector_store %arg11[%c0_35, %c0_36, %c0_37], %39 {strides = array<i32>} : memref<1x8x32xf32, #tpu.memory_space<vmem>>, vector<1x8x32xf32>,
    return
  }
  func.func @transform_0(%arg0: i32, %arg1: i32) -> (i32, i32, i32, i32) {
    %c0_i32 = arith.constant 0 : i32
    %c0_i32_0 = arith.constant 0 : i32
    %c0_i32_1 = arith.constant 0 : i32
    return %arg0, %arg1, %c0_i32, %c0_i32_0 : i32, i32, i32, i32
  }
  func.func @transform_1(%arg0: i32, %arg1: i32) -> (i32, i32, i32, i32) {
    %c0_i32 = arith.constant 0 : i32
    %c0_i32_0 = arith.constant 0 : i32
    %c0_i32_1 = arith.constant 0 : i32
    return %arg0, %arg1, %c0_i32, %c0_i32_0 : i32, i32, i32, i32
  }
  func.func @transform_2(%arg0: i32, %arg1: i32) -> (i32, i32, i32, i32) {
    %c0_i32 = arith.constant 0 : i32
    %c0_i32_0 = arith.constant 0 : i32
    %c0_i32_1 = arith.constant 0 : i32
    return %arg0, %arg1, %c0_i32, %c0_i32_0 : i32, i32, i32, i32
  }
  func.func @transform_3(%arg0: i32, %arg1: i32) -> (i32, i32, i32) {
    %c0_i32 = arith.constant 0 : i32
    %c0_i32_0 = arith.constant 0 : i32
    %c0_i32_1 = arith.constant 0 : i32
    return %arg0, %c0_i32, %c0_i32_0 : i32, i32, i32
  }
  func.func @transform_4(%arg0: i32, %arg1: i32) -> (i32, i32) {
    %c0_i32 = arith.constant 0 : i32
    %c0_i32_0 = arith.constant 0 : i32
    %c0_i32_1 = arith.constant 0 : i32
    return %c0_i32, %c0_i32_0 : i32, i32
  }
  func.func @transform_5(%arg0: i32, %arg1: i32) -> (i32, i32) {
    %c0_i32 = arith.constant 0 : i32
    %c0_i32_0 = arith.constant 0 : i32
    %c0_i32_1 = arith.constant 0 : i32
    return %c0_i32, %c0_i32_0 : i32, i32
  }
  func.func @transform_6(%arg0: i32, %arg1: i32) -> (i32, i32) {
    %c0_i32 = arith.constant 0 : i32
    %c0_i32_0 = arith.constant 0 : i32
    %c0_i32_1 = arith.constant 0 : i32
    return %c0_i32, %c0_i32_0 : i32, i32
  }
  func.func @transform_7(%arg0: i32, %arg1: i32) -> (i32, i32, i32) {
    %c0_i32 = arith.constant 0 : i32
    %c0_i32_0 = arith.constant 0 : i32
    %c0_i32_1 = arith.constant 0 : i32
    return %arg1, %c0_i32, %c0_i32_0 : i32, i32, i32
  }
  func.func @transform_8(%arg0: i32, %arg1: i32) -> (i32, i32) {
    %c0_i32 = arith.constant 0 : i32
    %c0_i32_0 = arith.constant 0 : i32
    %c0_i32_1 = arith.constant 0 : i32
    return %c0_i32, %c0_i32_0 : i32, i32
  }
  func.func @transform_9(%arg0: i32, %arg1: i32) -> (i32, i32, i32) {
    %c0_i32 = arith.constant 0 : i32
    %c0_i32_0 = arith.constant 0 : i32
    %c0_i32_1 = arith.constant 0 : i32
    return %arg0, %c0_i32, %c0_i32_0 : i32, i32, i32
  }
}

</mosaic_0001>

<bundles_post_ra>
// kernel: tpu_custom_call.1
= control target key start
LH: loop header
LB: loop body
LE: loop exit
PB: predicated region body
PF: predicated region fallthrough
CT: control target
= control target key end

     0   :  { %s2399_s0 = inlined_call_operand.hbm [shape: f32[2,4,8,8], index: 0, kind: input, shape index: {}]   ;;  %s2400_s1 = inlined_call_operand.hbm [shape: f32[2,4,8,8], index: 1, kind: input, shape index: {}]   ;;  %s2401_s2 = inlined_call_operand.hbm [shape: f32[2,4,8,8], index: 2, kind: input, shape index: {}]   ;;  %s2402_s3 = inlined_call_operand.hbm [shape: f32[2,8,8], index: 3, kind: input, shape index: {}]   ;;  %s2403_s4 = inlined_call_operand.vmem [shape: f32[8,8], index: 4, kind: input, shape index: {}]   ;;  %s2404_s5 = inlined_call_operand.vmem [shape: f32[8,8], index: 5, kind: input, shape index: {}]   ;;  %s2405_s6 = inlined_call_operand.hbm [shape: f32[8,8], index: 6, kind: input, shape index: {}]   ;;  %s2406_s7 = inlined_call_operand.hbm [shape: f32[4,8,32], index: 7, kind: input, shape index: {}]   ;;  %s2407_s8 = inlined_call_operand.vmem [shape: f32[1,32], index: 8, kind: input, shape index: {}]   ;;  %s2408_s9 = inlined_call_operand.hbm [shape: f32[2,8,32], index: 9, kind: output, shape index: {}]  }
   0x1   :  { %2430 = sst [smem:[#allocation31_spill]] %s2399_s0 }
   0x2   :  { %2431 = sst [smem:[#allocation32_spill]] %s2400_s1 }
   0x3   :  { %2432 = sst [smem:[#allocation33_spill]] %s2403_s4 }
   0x4   :  { %2433 = sst [smem:[#allocation34_spill]] %s2404_s5 }
   0x5   :  { %2434 = sst [smem:[#allocation35_spill]] %s2405_s6 }
   0x6   :  { %2435 = sst [smem:[#allocation36_spill]] %s2406_s7 }
   0x7   :  { %2436 = sst [smem:[#allocation37_spill]] %s2407_s8 }
   0x8   :  { %2437 = sst [smem:[#allocation38_spill]] %s2408_s9 }
   0x9   :  { %14 = vsyncpa [#allocation3], 0 }
   0xa   :  { %16 = vsyncpa [#allocation3 + $0x1], 0 }
   0xb   :  { %17 = vsyncpa [#allocation6], 0 }
   0xc   :  { %19 = vsyncpa [#allocation6 + $0x1], 0 }
   0xd   :  { %20 = vsyncpa [#allocation9], 0 }
   0xe   :  { %22 = vsyncpa [#allocation9 + $0x1], 0 }
   0xf   :  { %23 = vsyncpa [#allocation12], 0 }
  0x10   :  { %25 = vsyncpa [#allocation12 + $0x1], 0 }
  0x11   :  { %26 = vsyncpa [#allocation4], 0 }
  0x12   :  { %28 = vsyncpa [#allocation4 + $0x1], 0  ;;  %s1852_s30 = smov 0   ;;  %s1854_s10 = smov 0  }
  0x13   :  { %s1856_s11 = smov 0   ;;  %s1858_s12 = smov 0  }
  0x14   :  { %s1860_s13 = smov 0   ;;  %s1862_s14 = smov 0  }
  0x15   :  { %s1864_s15 = smov 0   ;;  %s1866_s16 = smov 0  }
  0x16   :  { %s1868_s17 = smov 0   ;;  %s1870_s18 = smov 0  }
  0x17   :  { %s1872_s19 = smov 0   ;;  %s1874_s20 = smov 0  }
  0x18   :  { %s1876_s21 = smov 0   ;;  %s1878_s22 = smov 0  }
  0x19 LB: > { %2438 = sst [smem:[#allocation20_spill]] %s1739_s30  ;;  %s1923_s23 = sadd.s32 4294967295, %s1791_s22   ;;  %s1791_s22 = sphi %s1878_s22, %s34_s22   ;;  %s1787_s21 = sphi %s1876_s21, %s2514_s21   ;;  %s1783_s20 = sphi %s1874_s20, %s2503_s20   ;;  %s1779_s19 = sphi %s1872_s19, %s2513_s19   ;;  %s1775_s18 = sphi %s1870_s18, %s2502_s18   ;;  %s1771_s17 = sphi %s1868_s17, %s2512_s17   ;;  %s1767_s16 = sphi %s1866_s16, %s2511_s16   ;;  %s1763_s15 = sphi %s1864_s15, %s2500_s15   ;;  %s1759_s14 = sphi %s1862_s14, %s2510_s14   ;;  %s1755_s13 = sphi %s1860_s13, %s2509_s13   ;;  %s1751_s12 = sphi %s1858_s12, %s2508_s12   ;;  %s1747_s11 = sphi %s1856_s11, %s2507_s11   ;;  %s1743_s10 = sphi %s1854_s10, %s2506_s10   ;;  %s1739_s30 = sphi %s1852_s30, %s2505_s30  }
  0x1a   : > { %2439 = sst [smem:[#allocation21_spill]] %s1767_s16  ;;  %p1209_p0 = scmp.ge.s32.totalorder %s1791_s22, 1 }
  0x1b   : > { %2440 = sst [smem:[#allocation22_spill]] %s1775_s18  ;;  %p2410_p1 = scmp.eq.s32.totalorder %s1923_s23, 0 }
  0x1c   : > { %2441 = sst [smem:[#allocation23_spill]] %s1779_s19  ;;  %p297_p3 = scmp.lt.s32.totalorder %s1791_s22, 9 }
  0x1d   : > { %2442 = sst [smem:[#allocation24_spill]] %s1783_s20  ;;  %s1793_s25 = smov [#allocation10]  }
  0x1e   : > { %p1929_p4 = pnand %p1209_p0, %p297_p3  ;;  %s316_s26 = sshll.u32 %s1793_s25, 4  ;;  %s317_s26 = int_to_ptr.vmem [resolvable:$true] %s316_s26 }
  0x1f   : > { %s2446_s6 = sld [smem:[#allocation35_spill]] }
  0x20   : > { %s2443_s24 = scalar_select %p1929_p4, 1, 0 }
  0x21   : > { %p1304_p5 = pneg %p1929_p4 }
  0x22   : > { %2444 = sst [smem:[#allocation25_spill]] %s2443_s24 }
  0x23   : > { %p1937_p6 = pnand %p1304_p5, %p2410_p1 }
  0x25   : > { %s1451_s9 = scalar_lea.hbm %s2446_s6, 128  ;;  %p1453_p8 = pneg %p1937_p6 }
  0x26   : > { %p1452_p7 = scmp.ne.s32.totalorder %s2446_s6, %s1451_s9  ;;  %p1458_p11 = scmp.lt.u32.totalorder %s1451_s9, %s2446_s6 }
  0x28   : > { %p1454_p9 = pnand %p1453_p8, %p1452_p7 }
  0x2a   : > { %p1455_p10 = pneg %p1454_p9 }
  0x2c   : > { %p1460_p12 = pnand %p1458_p11, %p1455_p10 }
  0x2e   : > { %1463 = shalt.err (!%p1460_p12)
}
  0x2f   : > { %s1464_s4 = scalar_lea.vmem %s317_s26, 128  ;;  %p1472_p5 = scmp.lt.s32.totalorder %s317_s26, %s317_s26 }
  0x30   : > { %p1465_p13 = scmp.ne.s32.totalorder %s317_s26, %s1464_s4  ;;  %p1473_p2 = scmp.lt.s32.totalorder %s1464_s4, %s1464_s4 }
  0x32   : > { %p1467_p0 = pnand %p1465_p13, %p1453_p8  ;;  %p1474_p1 = por %p1473_p2, %p1472_p5 }
  0x34   : > { %p1468_p3 = pneg %p1467_p0 }
  0x36   : > { %p1475_p4 = pnand %p1474_p1, %p1468_p3 }
  0x38   : > { %1478 = shalt.err (!%p1475_p4)
}
  0x39   : > { %1307 = dma.hbm_to_vmem [thread:$0]  (!%p1937_p6), %s2446_s6, 128, %s317_s26, [#allocation9]  }
  0x3a   : > { %s43_s4 = sadd.s32 1, %s1783_s20  ;;  %s46_s9 = sadd.s32 1, %s1787_s21 }
  0x3b   : > { %p44_p1 = scmp.ge.s32.totalorder %s43_s4, 4  ;;  %s55_s18 = sadd.s32 1, %s1771_s17 }
  0x3c   : > { %p62_p2 = scmp.ne.s32.totalorder %s1771_s17, %s1767_s16  ;;  %p2422_p4 = scmp.eq.s32.totalorder %s1791_s22, 0 }
  0x3d   : > { %s2516_s4 = smov (%p44_p1, %s43_s4), 0  ;;  %s2518_s9 = smov (!%p44_p1, %s46_s9), %s1787_s21 }
  0x3e   : > { %2447 = sst [smem:[#allocation26_spill]] %s2516_s4  ;;  %s1968_s27 = ssub.s32 %s1783_s20, %s2516_s4 }
  0x3f   : > { %2448 = sst [smem:[#allocation27_spill]] %s1968_s27  ;;  %p1972_p6 = por %p2422_p4, %p62_p2 }
  0x40   : > { %p48_p7 = scmp.ge.s32.totalorder %s2518_s9, 2  ;;  %p68_p8 = scmp.ne.s32.totalorder %s1767_s16, %s1763_s15 }
  0x41   : > { %p2420_p10 = scmp.lt.s32.totalorder %s1791_s22, 8  ;;  %p2451_p11 = scmp.eq.s32.totalorder %s1923_s23, 0 }
  0x42   : > { %s2520_s9 = smov (%p48_p7, %s2518_s9), 0  ;;  %s2414_s29 = sand.u32 1, %s1771_s17  }
  0x43   : > { %2450 = sst [smem:[#allocation28_spill]] %s2520_s9  ;;  %p1984_p12 = por %p2451_p11, %p68_p8 }
  0x44   : > { %s1991_s25 = ssub.s32 %s1787_s21, %s2520_s9  ;;  %s1995_s8 = sshll.u32 %s2414_s29, 3 }
  0x45   : > { %s2452_s28 = scalar_select %p1984_p12, 1, 0 }
  0x46   : > { %s52_s15 = sor.u32 %s1968_s27, %s1991_s25  ;;  %s1213_s19 = sshll.u32 %s1787_s21, 2 }
  0x47   : > { %2453 = sst [smem:[#allocation29_spill]] %s2452_s28  ;;  %p53_p0 = scmp.eq.s32.totalorder %s52_s15, 0 }
  0x48   : > { %s339_s6 = sadd.s32 %s1783_s20, %s1213_s19  ;;  %p2006_p3 = pnand %p2420_p10, %p1972_p6 }
  0x49   : > { %s2011_s9 = scalar_select %p53_p0, %s1771_s17, %s55_s18  }
  0x4a   : > { %s2454_s4 = scalar_select %p2006_p3, 1, 0 }
  0x4b   : > { %2455 = sst [smem:[#allocation30_spill]] %s2011_s9  ;;  %s2013_s5 = sshll.u32 %s339_s6, 7 }
  0x4c   : > { %s2421_s29 = sand.u32 1, %s1791_s22   ;;  %s2456_s1 = sld [smem:[#allocation32_spill]] }
  0x4d   : > { %s354_s26 = scalar_lea.vmem [#allocation5], %s1995_s8  ;;  %s2027_s18 = scalar_lea.sflag [#allocation6], %s2421_s29 }
  0x4e   : > { %s363_s15 = sshll.u32 %s354_s26, 4  ;;  %p2033_p1 = pneg %p2006_p3  ;;  %s2023_s15 = int_to_ptr.vmem [resolvable:$true] %s363_s15 }
  0x52   : > { %s2020_s24 = scalar_lea.hbm %s2456_s1, %s2013_s5  ;;  %s1484_s26 = scalar_lea.hbm %s2456_s1, 1024 }
  0x53   : > { %s1479_s6 = scalar_lea.hbm %s2020_s24, 128  ;;  %p1485_p7 = scmp.lt.u32.totalorder %s2020_s24, %s2456_s1 }
  0x54   : > { %p1480_p5 = scmp.ne.s32.totalorder %s2020_s24, %s1479_s6  ;;  %p1486_p8 = scmp.lt.u32.totalorder %s1484_s26, %s1479_s6 }
  0x55   : > { %p1488_p0 = scmp.lt.u32.totalorder %s1479_s6, %s2020_s24 }
  0x56   : > { %p1482_p2 = pnand %p2033_p1, %p1480_p5  ;;  %p1487_p11 = por %p1486_p8, %p1485_p7 }
  0x58   : > { %p1483_p6 = pneg %p1482_p2  ;;  %p1489_p9 = por %p1488_p0, %p1487_p11 }
  0x5a   : > { %p1490_p10 = pnand %p1489_p9, %p1483_p6 }
  0x5c   : > { %1493 = shalt.err (!%p1490_p10)
}
  0x5d   : > { %s1494_s29 = scalar_lea.vmem %s2023_s15, 128  ;;  %s1794_s16 = smov [#allocation5]  }
  0x5e   : > { %p1495_p5 = scmp.ne.s32.totalorder %s2023_s15, %s1494_s29  ;;  %s1499_s28 = sshll.u32 %s1794_s16, 4  ;;  %s1500_s28 = int_to_ptr.vmem [resolvable:$false] %s1499_s28 }
  0x5f   : > { %s1501_s7 = scalar_lea.vmem %s1500_s28, 256  ;;  %p1502_p13 = scmp.lt.s32.totalorder %s2023_s15, %s1500_s28 }
  0x60   : > { %p1497_p2 = pnand %p1495_p5, %p2033_p1  ;;  %p1503_p12 = scmp.lt.s32.totalorder %s1501_s7, %s1494_s29 }
  0x62   : > { %p1498_p4 = pneg %p1497_p2  ;;  %p1504_p7 = por %p1503_p12, %p1502_p13 }
  0x64   : > { %p1505_p8 = pnand %p1504_p7, %p1498_p4 }
  0x66   : > { %1508 = shalt.err (!%p1505_p8)
}
  0x67   : > { %1314 = dma.hbm_to_vmem [thread:$0]  (!%p2006_p3), %s2020_s24, 128, %s2023_s15, %s2027_s18  }
  0x68   : > { %s2458_s0 = sld [smem:[#allocation31_spill]]  ;;  %s334_s29 = scalar_lea.vmem [#allocation2], %s1995_s8 }
  0x69   : > { %s343_s16 = sshll.u32 %s334_s29, 4  ;;  %s2070_s1 = scalar_lea.hbm %s2401_s2, %s2013_s5  ;;  %s2064_s16 = int_to_ptr.vmem [resolvable:$true] %s343_s16 }
  0x6a   : > { %s2459_s20 = sand.u32 1, %s1771_s17  }
  0x6b   : > { %s331_s24 = scalar_lea.sflag [#allocation3], %s2459_s20 }
  0x6e   : > { %s2061_s26 = scalar_lea.hbm %s2458_s0, %s2013_s5  ;;  %s1514_s30 = scalar_lea.hbm %s2458_s0, 1024 }
  0x6f   : > { %s1509_s15 = scalar_lea.hbm %s2061_s26, 128  ;;  %p1515_p12 = scmp.lt.u32.totalorder %s2061_s26, %s2458_s0 }
  0x70   : > { %p1510_p4 = scmp.ne.s32.totalorder %s2061_s26, %s1509_s15  ;;  %p1516_p13 = scmp.lt.u32.totalorder %s1514_s30, %s1509_s15 }
  0x71   : > { %p1518_p11 = scmp.lt.u32.totalorder %s1509_s15, %s2061_s26 }
  0x72   : > { %p1512_p9 = pnand %p1510_p4, %p2033_p1  ;;  %p1517_p6 = por %p1516_p13, %p1515_p12 }
  0x74   : > { %p1513_p10 = pneg %p1512_p9  ;;  %p1519_p0 = por %p1518_p11, %p1517_p6 }
  0x76   : > { %p1520_p5 = pnand %p1519_p0, %p1513_p10 }
  0x78   : > { %1523 = shalt.err (!%p1520_p5)
}
  0x79   : > { %s1524_s5 = scalar_lea.vmem %s2064_s16, 128  ;;  %s1795_s20 = smov [#allocation2]  }
  0x7a   : > { %p1525_p2 = scmp.ne.s32.totalorder %s2064_s16, %s1524_s5  ;;  %s1529_s28 = sshll.u32 %s1795_s20, 4  ;;  %s1530_s28 = int_to_ptr.vmem [resolvable:$false] %s1529_s28 }
  0x7b   : > { %s1531_s27 = scalar_lea.vmem %s1530_s28, 256  ;;  %p1532_p4 = scmp.lt.s32.totalorder %s2064_s16, %s1530_s28 }
  0x7c   : > { %p1527_p7 = pnand %p1525_p2, %p2033_p1  ;;  %p1533_p9 = scmp.lt.s32.totalorder %s1531_s27, %s1524_s5 }
  0x7e   : > { %p1528_p8 = pneg %p1527_p7  ;;  %p1534_p12 = por %p1533_p9, %p1532_p4 }
  0x80   : > { %p1535_p13 = pnand %p1534_p12, %p1528_p8 }
  0x82   : > { %1538 = shalt.err (!%p1535_p13)
}
  0x83   : > { %1311 = dma.hbm_to_vmem [thread:$0]  (!%p2006_p3), %s2061_s26, 128, %s2064_s16, %s331_s24  }
  0x84   : > { %s374_s30 = scalar_lea.vmem [#allocation7], %s1995_s8  ;;  %s1539_s15 = scalar_lea.hbm %s2070_s1, 128 }
  0x85   : > { %s383_s7 = sshll.u32 %s374_s30, 4  ;;  %p1540_p10 = scmp.ne.s32.totalorder %s2070_s1, %s1539_s15  ;;  %s384_s7 = int_to_ptr.vmem [resolvable:$true] %s383_s7 }
  0x86   : > { %s1544_s29 = scalar_lea.hbm %s2401_s2, 1024  ;;  %p1545_p0 = scmp.lt.u32.totalorder %s2070_s1, %s2401_s2 }
  0x87   : > { %p1542_p6 = pnand %p1540_p10, %p2033_p1  ;;  %p1546_p5 = scmp.lt.u32.totalorder %s1544_s29, %s1539_s15 }
  0x88   : > { %p1548_p7 = scmp.lt.u32.totalorder %s1539_s15, %s2070_s1 }
  0x89   : > { %p1543_p11 = pneg %p1542_p6  ;;  %p1547_p2 = por %p1546_p5, %p1545_p0 }
  0x8b   : > { %p1549_p8 = por %p1548_p7, %p1547_p2 }
  0x8d   : > { %p1550_p4 = pnand %p1549_p8, %p1543_p11 }
  0x8f   : > { %1553 = shalt.err (!%p1550_p4)
}
  0x90   : > { %s1554_s8 = scalar_lea.vmem %s384_s7, 128  ;;  %s1796_s26 = smov [#allocation7]  }
  0x91   : > { %p1555_p9 = scmp.ne.s32.totalorder %s384_s7, %s1554_s8  ;;  %s1559_s16 = sshll.u32 %s1796_s26, 4  ;;  %s1560_s16 = int_to_ptr.vmem [resolvable:$false] %s1559_s16 }
  0x92   : > { %s1561_s24 = scalar_lea.vmem %s1560_s16, 256  ;;  %p1562_p10 = scmp.lt.s32.totalorder %s384_s7, %s1560_s16 }
  0x93   : > { %p1557_p12 = pnand %p1555_p9, %p2033_p1  ;;  %p1563_p6 = scmp.lt.s32.totalorder %s1561_s24, %s1554_s8 }
  0x95   : > { %p1558_p13 = pneg %p1557_p12  ;;  %p1564_p3 = por %p1563_p6, %p1562_p10 }
  0x97   : > { %p1565_p0 = pnand %p1564_p3, %p1558_p13 }
  0x99   : > { %1568 = shalt.err (!%p1565_p0)
}
  0x9a   : > { %p2460_p5 = scmp.ne.s32.totalorder %s2454_s4, 0  ;;  %s1208_s19 = sadd.s32 4294967294, %s1791_s22  }
  0x9b   : > { %s137_s28 = sadd.s32 1, %s1759_s14  ;;  %p2461_p3 = scmp.eq.s32.totalorder %s1991_s25, 0 }
  0x9c   : > { %1317 = dma.hbm_to_vmem [thread:$0]  (!%p2460_p5), %s2070_s1, 128, %s384_s7, %s2027_s18  }
  0x9d   : > { %s2119_s4 = scalar_select %p2461_p3, %s1759_s14, %s137_s28  }
  0x9e   : > { %p144_p1 = scmp.ne.s32.totalorder %s1759_s14, %s1755_s13  ;;  %p150_p11 = scmp.ne.s32.totalorder %s1755_s13, %s1751_s12 }
  0x9f   : > { %p290_p2 = scmp.eq.s32.totalorder %s1208_s19, 7  ;;  %s392_s27 = sand.u32 1, %s1759_s14  }
  0xa0   : > { %p2462_p7 = scmp.eq.s32.totalorder %s1791_s22, 0  ;;  %p2463_p4 = scmp.eq.s32.totalorder %s1923_s23, 0 }
  0xa1   : > { %p2465_p12 = scmp.eq.s32.totalorder %s1923_s23, 7  ;;  %p2140_p10 = por %p290_p2, %p150_p11 }
  0xa2   : > { %p146_p8 = por %p144_p1, %p2462_p7  ;;  %p2130_p9 = por %p150_p11, %p2463_p4 }
  0xa3   : > { %p2136_p13 = por %p2465_p12, %p144_p1  ;;  %s1221_s18 = sshll.u32 %s392_s27, 3 }
  0xa4   : > { %s2467_s25 = scalar_select %p2140_p10, 1, 0 }
  0xa5   : > { %s2466_s1 = scalar_select %p2136_p13, 1, 0 }
  0xa6   : > { %s1222_s7 = sshll.u32 %s1787_s21, 7  ;;  %s394_s29 = scalar_lea.vmem [#allocation8], %s1221_s18 }
  0xa7   : > { %s2148_s6 = scalar_lea.hbm %s2402_s3, %s1222_s7  ;;  %s401_s5 = sshll.u32 %s394_s29, 4  ;;  %s2156_s5 = int_to_ptr.vmem [resolvable:$true] %s401_s5 }
  0xa8   : > { %p2468_p6 = scmp.lt.s32.totalorder %s1791_s22, 8  ;;  %s2470_s8 = sand.u32 1, %s1791_s22  }
  0xa9   : > { %s391_s26 = scalar_lea.sflag [#allocation9], %s2470_s8  ;;  %s1569_s16 = scalar_lea.hbm %s2148_s6, 128 }
  0xaa   : > { %p2152_p0 = pnand %p2468_p6, %p146_p8  ;;  %p1570_p5 = scmp.ne.s32.totalorder %s2148_s6, %s1569_s16 }
  0xab   : > { %s1574_s28 = scalar_lea.hbm %s2402_s3, 256  ;;  %p1575_p2 = scmp.lt.u32.totalorder %s2148_s6, %s2402_s3 }
  0xac   : > { %p1571_p3 = pneg %p2152_p0  ;;  %p1576_p7 = scmp.lt.u32.totalorder %s1574_s28, %s1569_s16 }
  0xad   : > { %p1578_p4 = scmp.lt.u32.totalorder %s1569_s16, %s2148_s6 }
  0xae   : > { %p1572_p1 = pnand %p1571_p3, %p1570_p5  ;;  %p1577_p8 = por %p1576_p7, %p1575_p2 }
  0xb0   : > { %p1573_p11 = pneg %p1572_p1  ;;  %p1579_p12 = por %p1578_p4, %p1577_p8 }
  0xb2   : > { %p1580_p6 = pnand %p1579_p12, %p1573_p11 }
  0xb4   : > { %1583 = shalt.err (!%p1580_p6)
}
  0xb5   : > { %s1584_s7 = scalar_lea.vmem %s2156_s5, 128  ;;  %s1797_s15 = smov [#allocation8]  }
  0xb6   : > { %p1585_p5 = scmp.ne.s32.totalorder %s2156_s5, %s1584_s7  ;;  %s1589_s9 = sshll.u32 %s1797_s15, 4  ;;  %s1590_s9 = int_to_ptr.vmem [resolvable:$false] %s1589_s9 }
  0xb7   : > { %s1591_s29 = scalar_lea.vmem %s1590_s9, 256  ;;  %p1592_p13 = scmp.lt.s32.totalorder %s2156_s5, %s1590_s9 }
  0xb8   : > { %p1587_p1 = pnand %p1585_p5, %p1571_p3  ;;  %p1593_p2 = scmp.lt.s32.totalorder %s1591_s29, %s1584_s7 }
  0xba   : > { %p1588_p10 = pneg %p1587_p1  ;;  %p1594_p7 = por %p1593_p2, %p1592_p13 }
  0xbc   : > { %p1595_p8 = pnand %p1594_p7, %p1588_p10 }
  0xbe   : > { %1598 = shalt.err (!%p1595_p8)
}
  0xbf   : > { %s2471_s8 = sld [smem:[#allocation27_spill]]  ;;  %s2472_s16 = sld [smem:[#allocation20_spill]] }
  0xc0   : > { %s2473_s24 = sld [smem:[#allocation24_spill]]  ;;  %s226_s19 = sadd.s32 1, %s1747_s11 }
  0xc1   : > { %1320 = dma.hbm_to_vmem [thread:$0]  (!%p2152_p0), %s2148_s6, 128, %s2156_s5, %s391_s26  }
  0xc2   : > { %p233_p13 = scmp.ne.s32.totalorder %s1747_s11, %s1743_s10  ;;  %p2475_p3 = scmp.eq.s32.totalorder %s1791_s22, 0 }
  0xc3   : > { %s408_s20 = sand.u32 1, %s1747_s11   ;;  %p2476_p12 = scmp.eq.s32.totalorder %s1923_s23, 0 }
  0xc4   : > { %p235_p11 = por %p233_p13, %p2475_p3  ;;  %s1223_s7 = sshll.u32 %s408_s20, 3 }
  0xc5   : > { %p2474_p10 = scmp.eq.s32.totalorder %s2471_s8, 0  ;;  %p239_p4 = scmp.ne.s32.totalorder %s1743_s10, %s2472_s16 }
  0xc6   : > { %s1224_s27 = sshll.u32 %s2473_s24, 7  ;;  %s2478_s29 = sld [smem:[#allocation36_spill]] }
  0xc7   : > { %s2191_s28 = scalar_select %p2474_p10, %s1747_s11, %s226_s19  }
  0xc8   : > { %p2201_p6 = por %p239_p4, %p2476_p12  ;;  %p2479_p0 = scmp.lt.s32.totalorder %s1791_s22, 8 }
  0xc9   : > { %s412_s26 = scalar_lea.vmem [#allocation11], %s1223_s7  ;;  %s409_s16 = scalar_lea.sflag [#allocation12], %s408_s20 }
  0xca   : > { %s2477_s18 = scalar_select %p2201_p6, 1, 0 }
  0xcb   : > { %p2212_p5 = pnand %p2479_p0, %p235_p11  ;;  %s419_s8 = sshll.u32 %s412_s26, 4  ;;  %s2216_s8 = int_to_ptr.vmem [resolvable:$true] %s419_s8 }
  0xcc   : > { %s2208_s6 = scalar_lea.hbm %s2478_s29, %s1224_s27  ;;  %s1604_s15 = scalar_lea.hbm %s2478_s29, 512 }
  0xcd   : > { %s1599_s24 = scalar_lea.hbm %s2208_s6, 128  ;;  %p1601_p2 = pneg %p2212_p5 }
  0xce   : > { %p1600_p1 = scmp.ne.s32.totalorder %s2208_s6, %s1599_s24  ;;  %p1605_p13 = scmp.lt.u32.totalorder %s2208_s6, %s2478_s29 }
  0xcf   : > { %p1606_p10 = scmp.lt.u32.totalorder %s1604_s15, %s1599_s24  ;;  %p1608_p11 = scmp.lt.u32.totalorder %s1599_s24, %s2208_s6 }
  0xd0   : > { %p1602_p7 = pnand %p1601_p2, %p1600_p1 }
  0xd1   : > { %p1607_p3 = por %p1606_p10, %p1605_p13 }
  0xd2   : > { %p1603_p8 = pneg %p1602_p7 }
  0xd3   : > { %p1609_p4 = por %p1608_p11, %p1607_p3 }
  0xd5   : > { %p1610_p12 = pnand %p1609_p4, %p1603_p8 }
  0xd7   : > { %1613 = shalt.err (!%p1610_p12)
}
  0xd8   : > { %s1614_s20 = scalar_lea.vmem %s2216_s8, 128  ;;  %s1798_s7 = smov [#allocation11]  }
  0xd9   : > { %p1615_p0 = scmp.ne.s32.totalorder %s2216_s8, %s1614_s20  ;;  %s1619_s26 = sshll.u32 %s1798_s7, 4  ;;  %s1620_s26 = int_to_ptr.vmem [resolvable:$false] %s1619_s26 }
  0xda   : > { %s1621_s0 = scalar_lea.vmem %s1620_s26, 256  ;;  %p1622_p6 = scmp.lt.s32.totalorder %s2216_s8, %s1620_s26 }
  0xdb   : > { %p1617_p1 = pnand %p1615_p0, %p1601_p2  ;;  %p1623_p13 = scmp.lt.s32.totalorder %s1621_s0, %s1614_s20 }
  0xdd   : > { %p1618_p7 = pneg %p1617_p1  ;;  %p1624_p10 = por %p1623_p13, %p1622_p6 }
  0xdf   : > { %p1625_p3 = pnand %p1624_p10, %p1618_p7 }
  0xe1   : > { %1628 = shalt.err (!%p1625_p3)
}
  0xe2   : > { %1323 = dma.hbm_to_vmem [thread:$0]  (!%p2212_p5), %s2208_s6, 128, %s2216_s8, %s409_s16  }
  0xe3   : > { %s2481_s24 = sld [smem:[#allocation25_spill]] }
  0xe9   : > { %p2482_p8 = scmp.ne.s32.totalorder %s2481_s24, 0 }
  0xea   : > { %s2483_s19 = sld [smem:[#allocation21_spill]] (!%p2482_p8)  ;;  %s2484_s27 = sld [smem:[#allocation29_spill]] (!%p2482_p8) }
  0xeb   : > { %428 = sbr.rel (%p2482_p8) target bundleno = 1308 (0x51c), region = 56 }
  0xf0   : > { %s430_s15 = sand.u32 (!%p2482_p8), 1, %s2483_s19   ;;  %p2485_p2 = scmp.ne.s32.totalorder (!%p2482_p8), %s2484_s27, 0 }
  0xf1   : > { %s2246_s9 = sshll.u32 (!%p2482_p8), %s430_s15, 3  ;;  %s431_s7 = scalar_lea.sflag (!%p2482_p8), [#allocation3], %s430_s15 }
  0xf2   : > { %s434_s26 = scalar_lea.vmem [#allocation2], %s2246_s9 }
  0xf3   : > { %1714 = dma.done.wait (%p2485_p2), %s431_s7, 128  }
  0xf4   : > { %1716 = vsyncadd (%p2485_p2), %s431_s7, 4294967168  ;;  %s439_s6 = sand.u32 1, %s1923_s23   ;;  %s443_s8 = scalar_lea.vmem [#allocation5], %s2246_s9 }
  0xf5   : > { %s440_s5 = scalar_lea.sflag [#allocation6], %s439_s6 }
  0xf6   : > { %1718 = dma.done.wait (%p2485_p2), %s440_s5, 256  }
  0xf7   : > { %1720 = vsyncadd (%p2485_p2), %s440_s5, 4294967040  ;;  %s2429_s16 = sand.u32 1, %s1755_s13   ;;  %s452_s0 = scalar_lea.vmem [#allocation7], %s2246_s9 }
  0xf8   : > { %s2262_s20 = sshll.u32 %s2429_s16, 3  ;;  %s458_s24 = scalar_lea.sflag [#allocation9], %s439_s6 }
  0xf9   : > { %s461_s19 = scalar_lea.vmem [#allocation8], %s2262_s20 }
  0xfa   : > { %1722 = dma.done.wait (%p2130_p9), %s458_s24, 128  }
  0xfb   : > { %1724 = vsyncadd (%p2130_p9), %s458_s24, 4294967168  ;;  %p2486_p6 = scmp.eq.s32.totalorder %s1923_s23, 0 }
  0xfd   : > { %1726 = dma.done.wait (%p2486_p6), [#allocation9], 128   ;;  %p2487_p5 = pmov %p2486_p6 }
  0xfe   : > { %s470_s27 = sand.u32 1, %s1743_s10   ;;  %p2488_p11 = scmp.ne.s32.totalorder %s2477_s18, 0 }
  0xff   : > { %1728 = vsyncadd (%p2487_p5), [#allocation9], 4294967168  ;;  %s2275_s15 = sshll.u32 %s470_s27, 3  ;;  %s471_s7 = scalar_lea.sflag [#allocation12], %s470_s27 }
 0x100   : > { %s474_s6 = scalar_lea.vmem [#allocation11], %s2275_s15 }
 0x101   : > { %1730 = dma.done.wait (%p2488_p11), %s471_s7, 128  }
 0x102   : > { %1732 = vsyncadd (%p2488_p11), %s471_s7, 4294967168  ;;  %v1799_v0 = vmov 0.0   ;;  %vm1800_vm0 = vmmov 0   ;;  %vm533_vm1 = vcmask 64512   ;;  %s2489_s5 = sld [smem:[#allocation34_spill]]  ;;  %s2490_s16 = sld [smem:[#allocation33_spill]] }
 0x103   : > { %1263 = vmatprep.subr.mxu1 %v1799_v0  ;;  %1258 = vmatprep.subr.mxu0 %v1799_v0  ;;  %v530_v3 = vld [vmem:[%s443_s8] sm:$0xff]  ;;  %v529_v4 = vld [vmem:[%s434_s26] sm:$0xff]  ;;  %v917_v24 = vld [vmem:[%s474_s6] sm:$0xff]  ;;  %s528_s18 = scalar_lea.vmem [#allocation13], %s2262_s20  ;;  %s2491_s9 = sld [smem:[#allocation22_spill]] }
 0x104   : > { %1265 = vmatprep.mubr.msk.f32.mxu1 %vm1800_vm0, %v1799_v0  ;;  %1260 = vmatprep.mubr.msk.f32.mxu0 %vm1800_vm0, %v1799_v0  ;;  %v682_v5 = vld [vmem:[#allocation10] sm:$0xff]  ;;  %v756_v12 = vld [vmem:[%s461_s19] sm:$0xff] }
 0x105   : > { %v531_v6 = vld [vmem:[%s452_s0] sm:$0xff] }
 0x108   : > { %v608_v1 = vld [vmem:[%s2489_s5] sm:$0xff] }
 0x109   : > { %v532_v2 = vld [vmem:[%s2490_s16] sm:$0xff]  ;;  %1264 = vmatpush3.msra.mxu1 %v608_v1  ;;  %p1240_p9 = scmp.ne.s32.totalorder %s2491_s9, 0 }
 0x10a   : > { %1259 = vmatpush3.msra.mxu0 %v532_v2  ;;  %1266 = vmatmul.mubr.msk.f32.vlgmr.msra.gmra.mrb[0].mxu1 %vm533_vm1, %v530_v3  ;;  %s2492_s16 = sld [smem:[#allocation37_spill]] (!%p1240_p9)  ;;  %vm1002_vm2 = vcmask (!%p1240_p9), 261120  }
 0x10b   : > { %1261 = vmatmul.mubr.msk.f32.vlgmr.msra.gmra.mrb[0].mxu0 %vm533_vm1, %v529_v4  ;;  %1273 = vmatprep.subr.mxu1 %v1799_v0 }
 0x10c   : > { %1275 = vmatprep.mubr.msk.f32.mxu1 %vm1800_vm0, %v1799_v0  ;;  %1268 = vmatprep.subr.mxu0 %v1799_v0 }
 0x10d   : > { %1270 = vmatprep.mubr.msk.f32.mxu0 %vm1800_vm0, %v1799_v0  ;;  %1269 = vmatpush3.msra.mxu0 %v682_v5 }
 0x10e   : > { %1278 = vmatprep.subr.mxu0 %v1799_v0 }
 0x10f   : > { %1271 = vmatmul.mubr.msk.f32.vlgmr.msra.gmra.mrb[2].mxu0 %vm533_vm1, %v531_v6 }
 0x110   : > { %1280 = vmatprep.mubr.msk.f32.mxu0 %vm1800_vm0, %v1799_v0  ;;  %v1241_v32 = vld [vmem:[%s2492_s16] ss:$0 sm:$0xff] (!%p1240_p9) }
 0x111   : > { %1003 = vst.msk [vmem:[%s528_s18] sm:$0xff] (!%p1240_p9), %vm1002_vm2, %v1241_v32 }
 0x1dd   : > { %v678_v7 = vpop.f32.mrb[0].mxu1 }
 0x1de   : > { %v603_v8 = vpop.f32.mrb[0].mxu0  ;;  %v1267_v10 = vpop.f32.mrb[1].mxu1  ;;  %1274 = vmatpush3.xpose.msk.msra.mxu1 %vm533_vm1, %v678_v7 }
 0x1df   : > { %v607_v9 = vmul.f32 0.17677669, %v603_v8  ;;  %v1262_v11 = vpop.f32.mrb[1].mxu0  ;;  %1283 = vmatprep.subr.mxu1 %v1799_v0 }
 0x1e1   : > { %1276 = vmatmul.mubr.msk.f32.vlgmr.msra.gmra.mrb[2].mxu1 %vm533_vm1, %v607_v9 }
 0x1e2   : > { %1285 = vmatprep.mubr.msk.f32.mxu1 %vm1800_vm0, %v1799_v0  ;;  %v752_v17 = vpop.f32.mrb[2].mxu0  ;;  %1284 = vmatpush3.msra.mxu1 %v917_v24 }
 0x1e3   : > { %v1272_v18 = vpop.f32.mrb[3].mxu0  ;;  %1279 = vmatpush3.msra.mxu0 %v752_v17 }
 0x2b4   : > { %v829_v13 = vpop.f32.mrb[2].mxu1 }
 0x2b5   : > { %v830_v14 = vadd.f32 %v829_v13, %v756_v12  ;;  %v1277_v15 = vpop.f32.mrb[3].mxu1 }
 0x2b7   : > { %v833_v16 = vsel %vm533_vm1, %v830_v14, -inf }
 0x2b8   : > { %834 = vmax.xlane.f32.xlu0 %v833_v16 }
 0x345   : > { %v835_v19 = vpop.xlane.xlu0 %834 }
 0x346   : > { %v836_v20 = vsub.f32 %v830_v14, %v835_v19 }
 0x348   : > { %v837_v21 = vmul.f32 1.442695, %v836_v20 }
 0x34a   : > { %1447 = vpow2.f32 %v837_v21 }
 0x354   : > { %v1448_v22 = vpop.eup %1447 }
 0x355   : > { %1281 = vmatmul.mubr.msk.f32.vlgmr.msra.gmra.mrb[4].mxu0 %vm533_vm1, %v1448_v22  ;;  %v839_v23 = vsel %vm533_vm1, %v1448_v22, 0.0 }
 0x356   : > { %840 = vadd.xlane.f32.xlu0 %v839_v23 }
 0x3e3   : > { %v841_v25 = vpop.xlane.xlu0 %840 }
 0x3e4   : > { %1449 = vrcp.f32 %v841_v25 }
 0x3ee   : > { %v1450_v26 = vpop.eup %1449 }
 0x428   : > { %v911_v27 = vpop.f32.mrb[4].mxu0 }
 0x429   : > { %v916_v28 = vmul.f32 %v1450_v26, %v911_v27  ;;  %v1282_v29 = vpop.f32.mrb[5].mxu0 }
 0x42b   : > { %1286 = vmatmul.mubr.msk.f32.vlgmr.msra.gmra.mrb[4].mxu1 %vm533_vm1, %v916_v28 }
 0x4f9   : > { %994 = sbr.rel (%p1240_p9) target bundleno = 1280 (0x500), region = 84 }
 0x4fe   : > { %v987_v30 = vpop.f32.mrb[4].mxu1 }
 0x4ff   : > { %v1287_v31 = vpop.f32.mrb[5].mxu1 }
 0x500 PF: > { %v1004_v33 = vld [vmem:[%s528_s18] sm:$0xff]  ;;  %s2493_s0 = sld [smem:[#allocation23_spill]]  ;;  %vm1006_vm3 = vcmask 261120   ;;  %s1022_s30 = sshll.u32 %s528_s18, 4  ;;  %s2322_s30 = int_to_ptr.vmem [resolvable:$true] %s1022_s30 }
 0x501   : > { %v1005_v34 = vadd.f32 %v1004_v33, %v987_v30  ;;  %s2494_s20 = sld [smem:[#allocation38_spill]]  ;;  %s2496_s5 = sand.u32 1, %s1755_s13  }
 0x502   : > { %s1009_s24 = scalar_lea.sflag [#allocation4], %s2496_s5  ;;  %s1629_s27 = scalar_lea.vmem %s2322_s30, 128 }
 0x503   : > { %1007 = vst.msk [vmem:[%s528_s18] sm:$0xff] %vm1006_vm3, %v1005_v34  ;;  %p1630_p4 = scmp.ne.s32.totalorder %s2322_s30, %s1629_s27  ;;  %p2497_p12 = scmp.ne.s32.totalorder %s2466_s1, 0 }
 0x504   : > { %s1801_s9 = smov [#allocation13]  }
 0x505   : > { %p1631_p0 = pnand %p1630_p4, %p2497_p12  ;;  %s1633_s26 = sshll.u32 %s1801_s9, 4  ;;  %s1634_s26 = int_to_ptr.vmem [resolvable:$false] %s1633_s26 }
 0x506   : > { %s1243_s19 = sshll.u32 %s2493_s0, 7  ;;  %s1635_s8 = scalar_lea.vmem %s1634_s26, 256 }
 0x507   : > { %s2495_s6 = smov %s2494_s20  ;;  %s2320_s23 = scalar_lea.hbm %s2494_s20, %s1243_s19 }
 0x508   : > { %p1632_p1 = pneg %p1631_p0  ;;  %p1636_p7 = scmp.lt.s32.totalorder %s2322_s30, %s1634_s26 }
 0x509   : > { %p1637_p13 = scmp.lt.s32.totalorder %s1635_s8, %s1629_s27 }
 0x50b   : > { %p1638_p10 = por %p1637_p13, %p1636_p7 }
 0x50d   : > { %p1639_p3 = pnand %p1638_p10, %p1632_p1 }
 0x50f   : > { %1642 = shalt.err (!%p1639_p3)
}
 0x510   : > { %s1643_s18 = scalar_lea.hbm %s2320_s23, 128  ;;  %s1647_s19 = scalar_lea.hbm %s2495_s6, 256 }
 0x511   : > { %p1644_p8 = scmp.ne.s32.totalorder %s2320_s23, %s1643_s18  ;;  %p1648_p5 = scmp.lt.u32.totalorder %s2320_s23, %s2495_s6 }
 0x512   : > { %p1649_p11 = scmp.lt.u32.totalorder %s1647_s19, %s1643_s18  ;;  %p1651_p4 = scmp.lt.u32.totalorder %s1643_s18, %s2320_s23 }
 0x513   : > { %p1645_p2 = pnand %p1644_p8, %p2497_p12 }
 0x514   : > { %p1650_p9 = por %p1649_p11, %p1648_p5 }
 0x515   : > { %p1646_p6 = pneg %p1645_p2 }
 0x516   : > { %p1652_p0 = por %p1651_p4, %p1650_p9 }
 0x518   : > { %p1653_p1 = pnand %p1652_p0, %p1646_p6 }
 0x51a   : > { %1656 = shalt.err (!%p1653_p1)
}
 0x51b   : > { %1302 = dma.vmem_to_hbm [thread:$0]  (%p2497_p12), %s2322_s30, 128, %s2320_s23, %s1009_s24  }
 0x51c PF: > { %p1331_p7 = scmp.ge.s32.totalorder %s1791_s22, 2  ;;  %s1034_s20 = sand.u32 1, %s1751_s12  }
 0x51d   : > { %p2498_p13 = scmp.ne.s32.totalorder %s2467_s25, 0  ;;  %s1035_s5 = scalar_lea.sflag [#allocation4], %s1034_s20 }
 0x51f   : > { %p1325_p10 = pnand %p1331_p7, %p2498_p13 }
 0x521   : > { %1734 = dma.done.wait (!%p1325_p10), %s1035_s5, 128  }
 0x522   : > { %1736 = vsyncadd (!%p1325_p10), %s1035_s5, 4294967168  ;;  %s34_s22 = sadd.s32 1, %s1791_s22   ;;  %s2500_s15 = sld [smem:[#allocation21_spill]] }
 0x523   : > { %p2352_p3 = scmp.ge.s32.totalorder %s34_s22, 10   ;;  %s2501_s1 = sld [smem:[#allocation30_spill]] }
 0x524   : > { %s2502_s18 = sld [smem:[#allocation24_spill]]  ;;  %s2503_s20 = sld [smem:[#allocation26_spill]] }
 0x525   : > { %s2504_s25 = sld [smem:[#allocation28_spill]]  ;;  %s2505_s30 = smov %s1743_s10 }
 0x526   : > { %s2506_s10 = smov %s1747_s11  ;;  %s2507_s11 = smov %s2191_s28 }
 0x527   : > { %s2508_s12 = smov %s1755_s13  ;;  %s2509_s13 = smov %s1759_s14 }
 0x528   : > { %s2510_s14 = smov %s2119_s4  ;;  %s2511_s16 = smov %s1771_s17 }
 0x529   : > { %s2512_s17 = smov %s2501_s1  ;;  %s2513_s19 = smov %s1787_s21 }
 0x52a   :  { %33 = sbr.rel (!%p2352_p3) target bundleno = 25 (0x19), region = 159 }
 0x52b   : > { %s2514_s21 = smov %s2504_s25 }
 0x531   :  { %1040 = vsyncpa [#allocation3], 1 }
 0x532   :  { %1042 = vsyncpa [#allocation3 + $0x1], 1 }
 0x533   :  { %1043 = vsyncpa [#allocation6], 1 }
 0x534   :  { %1045 = vsyncpa [#allocation6 + $0x1], 1 }
 0x535   :  { %1046 = vsyncpa [#allocation9], 1 }
 0x536   :  { %1048 = vsyncpa [#allocation9 + $0x1], 1 }
 0x537   :  { %1049 = vsyncpa [#allocation12], 1 }
 0x538   :  { %1051 = vsyncpa [#allocation12 + $0x1], 1 }
 0x539   :  { %1052 = vsyncpa [#allocation4], 1 }
 0x53a   :  { %1054 = vsyncpa [#allocation4 + $0x1], 1 }

</bundles_post_ra>
